<compile_context>
chip_gen: v5e
topology: v5e:2x2
jax: 0.10.0
libtpu: 0.0.40
codegen_flags: <defaults>
</compile_context>

<pallas_src>
import functools

import jax
import jax.numpy as jnp
from jax.experimental import pallas as pl
from jax.experimental.pallas import tpu as pltpu


# Finite stand-in for -inf: avoids exp(-inf - -inf) = NaN if a vocab tile is fully masked.
_NEG_BIG = -3.0e38


def _round_up(a, b):
    return (a + b - 1) // b * b


def _generator_kernel(mask_ref, x_ref, wt_ref, out_ref, m_ref, l_ref, *,
                      log_probs, apply_mask):
    # mask_ref: (1, tv)        additive 0 / -inf padding mask for this vocab tile (f32)
    # x_ref   : (tm, H)        row tile of the flattened input (bf16)
    # wt_ref  : (H, tv)        vocab tile of the transposed projection weight (bf16)
    # out_ref : (tm, tv)       normalized output tile (written only on pass 1)
    # m_ref   : (n_inner,tm,1) running max -> logsumexp per row tile of this group (f32)
    # l_ref   : (n_inner,tm,1) running sum of exp(s - m) per row tile of this group (f32)
    p = pl.program_id(1)   # pass: 0 = accumulate logsumexp, 1 = emit normalized output
    j = pl.program_id(2)   # vocab tile index
    i = pl.program_id(3)   # row tile index within the current group (innermost)
    n_j = pl.num_programs(2)

    # Logits tile on the MXU: bf16 x bf16 with f32 accumulation.
    s = jnp.dot(x_ref[...], wt_ref[...], preferred_element_type=jnp.float32)
    if apply_mask:
        # Additive 0 / -inf mask (PAD token + vocab-padding columns).  A plain VPU add
        # is far below the MXU / EUP cost of this tile; gating it per vocab tile would
        # require a scratch round trip of `s`, so it is applied unconditionally.
        s = s + mask_ref[...]

    @pl.when(p == 0)
    def _():
        # Online logsumexp: stats for row tile i persist in scratch across the j sweep.
        first = j == 0
        m_prev = jnp.where(first, _NEG_BIG, m_ref[i])   # scratch is garbage before j==0
        l_prev = jnp.where(first, 0.0, l_ref[i])
        m_new = jnp.maximum(m_prev, jnp.max(s, axis=-1, keepdims=True))
        l_new = l_prev * jnp.exp(m_prev - m_new) + jnp.sum(
            jnp.exp(s - m_new), axis=-1, keepdims=True)
        m_ref[i] = m_new
        l_ref[i] = l_new

        @pl.when(j == n_j - 1)
        def _():
            # Finalize once per row: store logsumexp so pass 1 needs a single (tm, 1)
            # read and no (approximate) reciprocal.
            m_ref[i] = m_new + jnp.log(l_new)

    @pl.when(p == 1)
    def _():
        lse = m_ref[i]                       # = m + log(l) after pass 0
        if log_probs:
            out = s - lse
        else:
            out = jnp.exp(s - lse)           # exactly normalized probabilities
        out_ref[...] = out.astype(out_ref.dtype)


def _hw_defaults():
    """Generation-dependent (tm, vmem_limit): v5e/v6e have 128 MiB VMEM, v7x has 64 MiB."""
    try:
        cap = int(getattr(pltpu.get_tpu_info(), "vmem_capacity_bytes", 0)) or None
    except Exception:
        cap = None
    if cap is None:
        return 512, 48 * 1024 * 1024                          # conservative fallback
    if cap <= 64 * 1024 * 1024:                                # v7x-class TensorCore
        return 512, min(56 * 1024 * 1024, int(cap * 0.85))
    return 1024, min(100 * 1024 * 1024, int(cap * 0.85))      # v5e / v6e


def _vmem_estimate(tm, tv, H, out_bytes, wt_buffers, group_tiles):
    wt = wt_buffers * H * tv * 2          # buffered weight tiles (bf16)
    xb = 2 * tm * H * 2                   # double-buffered activation tiles (bf16)
    ob = 2 * tm * tv * out_bytes          # double-buffered output tiles
    mk = 2 * tv * 4                       # mask tiles
    sc = 2 * group_tiles * tm * 128 * 4   # m / l scratch (lane-padded)
    im = 3 * tm * tv * 4                  # f32 intermediates (s, exp(s), ...)
    return wt + xb + ob + mk + sc + im


def prepare_generator_params(weight, *, padding_idx=-1, tv=2048):
    """One-time (init) preparation of the projection weight, mirroring Generator.__init__.

    weight : [n_words, hidden]  (same layout as nn.Linear(hidden, n_words).weight)
    Returns (wt, mask, n_words, tv, apply_mask):
      wt   : [hidden, v_pad] bf16, pre-transposed + pre-padded (no per-forward cost)
      mask : [1, v_pad]      f32 additive 0 / -inf row (PAD token + vocab padding)
    """
    V, H = weight.shape
    tv = int(min(tv, _round_up(V, 128)))
    v_pad = _round_up(V, tv)
    wt = weight.T.astype(jnp.bfloat16)
    if v_pad != V:
        wt = jnp.pad(wt, ((0, 0), (0, v_pad - V)))
    mask = jnp.zeros((1, v_pad), jnp.float32)
    if padding_idx != -1:
        mask = mask.at[0, padding_idx].set(-jnp.inf)
    if v_pad != V:
        mask = mask.at[0, V:].set(-jnp.inf)
    apply_mask = (padding_idx != -1) or (v_pad != V)
    return wt, mask, V, tv, apply_mask


def generator_forward(x, params, *, log_probs=True, tm=None, out_dtype=None,
                      group_tiles=8, wt_buffers=2, vmem_limit_bytes=None):
    """Generator.forward: log_softmax(x @ W^T + pad_mask, -1) (or softmax).

    x      : [B, T, H] activations (any float dtype; fed to the MXU in bf16).
    params : output of prepare_generator_params (built once at init).
    Returns: [B, T, n_words] in out_dtype (default f32 for log-probs, bf16 for probs).
    """
    wt, mask, V, tv, apply_mask = params
    B, T, H = x.shape
    H2, v_pad = wt.shape
    assert H == H2 and v_pad % tv == 0 and mask.shape == (1, v_pad)
    M = B * T

    tm_default, vmem_default = _hw_defaults()
    if tm is None:
        tm = tm_default
    if vmem_limit_bytes is None:
        vmem_limit_bytes = vmem_default
    if out_dtype is None:
        # bf16 halves the dominant M*V output writeback; f32 stays default for the
        # log-prob (loss) path -- pass out_dtype=jnp.bfloat16 to go further.
        out_dtype = jnp.float32 if log_probs else jnp.bfloat16

    # Row tile is the first knob: clamp to the (8-aligned) row count, then shrink if
    # the rough VMEM estimate would overrun the budget (keeps v7x's 64 MiB happy).
    tm = int(min(tm, _round_up(M, 8)))
    out_bytes = jnp.dtype(out_dtype).itemsize
    while tm > 128 and _vmem_estimate(tm, tv, H, out_bytes, max(2, wt_buffers),
                                      group_tiles) > 0.85 * vmem_limit_bytes:
        tm = max(128, _round_up(tm // 2, 8))

    n_row_tiles = pl.cdiv(M, tm)
    n_groups = pl.cdiv(n_row_tiles, group_tiles)   # leading, megacore-parallel axis
    n_inner = pl.cdiv(n_row_tiles, n_groups)       # row tiles per group (innermost axis)
    m_pad = n_groups * n_inner * tm
    n_j = v_pad // tv

    x2 = x.reshape(M, H)
    if m_pad != M:
        x2 = jnp.pad(x2, ((0, m_pad - M), (0, 0)))
    x2 = x2.astype(jnp.bfloat16)

    wt_index = lambda g, p, j, i: (0, j)           # independent of i -> stays resident
    wt_spec = pl.BlockSpec((H, tv), wt_index)
    if wt_buffers > 2:
        # Deeper buffering hides the weight-tile fetch at vocab-tile boundaries on
        # 128 MiB parts; fall back silently if this Pallas version lacks pipeline_mode.
        try:
            wt_spec = pl.BlockSpec((H, tv), wt_index,
                                   pipeline_mode=pl.Buffered(int(wt_buffers)))
        except Exception:
            pass

    kernel = functools.partial(_generator_kernel, log_probs=log_probs,
                               apply_mask=apply_mask)

    out_pad = pl.pallas_call(
        kernel,
        out_shape=jax.ShapeDtypeStruct((m_pad, v_pad), out_dtype),
        grid_spec=pltpu.PrefetchScalarGridSpec(
            num_scalar_prefetch=0,
            # (group, pass, vocab tile, row tile in group): row tiles innermost so the
            # (H, tv) weight tile is fetched only 2*n_j times per group instead of
            # 2*n_j times per row tile.
            grid=(n_groups, 2, n_j, n_inner),
            in_specs=[
                pl.BlockSpec((1, tv), lambda g, p, j, i: (0, j)),                # mask
                pl.BlockSpec((tm, H), lambda g, p, j, i: (g * n_inner + i, 0)),  # x rows
                wt_spec,                                                         # W^T tile
            ],
            # Pass 0: output index pinned to the block pass 1 writes first for this
            # group (no flush while pinned; even a spurious flush would be overwritten
            # by pass 1's first write).  Pass 1 writes each (row, vocab) block once.
            out_specs=pl.BlockSpec(
                (tm, tv), lambda g, p, j, i: (g * n_inner + i * p, j * p)),
            scratch_shapes=[
                pltpu.VMEM((n_inner, tm, 1), jnp.float32),  # running max -> logsumexp
                pltpu.VMEM((n_inner, tm, 1), jnp.float32),  # running sum of exp
            ],
        ),
        compiler_params=pltpu.CompilerParams(
            dimension_semantics=("parallel", "arbitrary", "arbitrary", "arbitrary"),
            vmem_limit_bytes=int(vmem_limit_bytes),
        ),
    )(mask, x2, wt)

    out = out_pad
    if m_pad != M or v_pad != V:
        out = out[:M, :V]   # only pays the extra copy when padding was actually needed
    return out.reshape(B, T, V)


def _reference(x, weight, padding_idx, log_probs=True):
    # Matches the kernel's numerics: bf16-quantized operands, f32 accumulation.
    xb = x.astype(jnp.bfloat16).astype(jnp.float32)
    wb = weight.astype(jnp.bfloat16).astype(jnp.float32)
    logits = jnp.einsum("bth,vh->btv", xb, wb, precision=jax.lax.Precision.HIGHEST)
    if padding_idx != -1:
        m = jnp.zeros((logits.shape[-1],), logits.dtype).at[padding_idx].set(-jnp.inf)
        logits = logits + m
    if log_probs:
        return jax.nn.log_softmax(logits, axis=-1)
    return jax.nn.softmax(logits, axis=-1)


if __name__ == "__main__":
    # Small shapes consistent with the module's forward:
    #   input: [batch, tgt_seq_len, hidden], proj.weight: [n_words, hidden]
    batch, seq, hidden, n_words = 2, 8, 64, 512
    padding_idx = 0

    key = jax.random.PRNGKey(0)
    kx, kw = jax.random.split(key)
    x = jax.random.normal(kx, (batch, seq, hidden), dtype=jnp.float32)
    # TODO(synk): my_init.embedding_init is unavailable; deterministic embedding-style
    # random init (normal * hidden**-0.5) stands in for proj.weight.
    weight = jax.random.normal(kw, (n_words, hidden), dtype=jnp.float32) * hidden ** -0.5

    # One-time (init) weight preparation: transpose + bf16 cast + pad + additive mask.
    params_small = prepare_generator_params(weight, padding_idx=padding_idx, tv=128)
    params_default = prepare_generator_params(weight, padding_idx=padding_idx)

    # log-softmax path, tiny tiles to exercise the (group, pass, vocab, row) grid.
    out_log = generator_forward(x, params_small, log_probs=True, tm=8, group_tiles=2)
    out_log = jax.block_until_ready(out_log)

    # Same math, split into 2 row groups (exercises the megacore-parallel group axis).
    out_log2 = generator_forward(x, params_small, log_probs=True, tm=8, group_tiles=1)
    out_log2 = jax.block_until_ready(out_log2)

    # softmax path with production defaults (generation-aware auto tiles, bf16 output).
    out_prob = generator_forward(x, params_default, log_probs=False)
    out_prob = jax.block_until_ready(out_prob)

    ref_log = _reference(x, weight, padding_idx, log_probs=True)
    ref_prob = _reference(x, weight, padding_idx, log_probs=False)

    assert out_log.shape == (batch, seq, n_words)
    assert out_prob.shape == (batch, seq, n_words)
    assert not bool(jnp.any(jnp.isnan(out_log)))
    assert not bool(jnp.any(jnp.isnan(out_prob.astype(jnp.float32))))

    # Only the PAD column is -inf in the log-prob output.
    col = jnp.arange(n_words)[None, None, :]
    assert bool(jnp.all((~jnp.isfinite(out_log)) == (col == padding_idx)))

    # Row-grouping must not change the result.
    assert bool(jnp.allclose(out_log, out_log2, atol=1e-5, rtol=1e-5))

    finite = jnp.isfinite(ref_log)
    assert bool(jnp.allclose(jnp.where(finite, out_log, 0.0),
                             jnp.where(finite, ref_log, 0.0),
                             atol=2e-3, rtol=2e-3))

    probs = out_prob.astype(jnp.float32)
    assert bool(jnp.allclose(probs, ref_prob, atol=5e-3, rtol=2e-2))
    assert bool(jnp.all(probs[..., padding_idx] == 0.0))
    assert bool(jnp.allclose(probs.sum(-1), 1.0, atol=2e-2))

    print("KERNEL_OK")
</pallas_src>

<mosaic_0001>
module attributes {stable_mosaic.version = 11 : i64} {
  func.func @_generator_kernel(%arg0: i32, %arg1: i32, %arg2: i32, %arg3: i32, %arg4: memref<1x128xf32, #tpu.memory_space<vmem>>, %arg5: memref<8x64xbf16, #tpu.memory_space<vmem>>, %arg6: memref<64x128xbf16, #tpu.memory_space<vmem>>, %arg7: memref<8x128xf32, #tpu.memory_space<vmem>>, %arg8: memref<2x8x1xf32, #tpu.memory_space<vmem>>, %arg9: memref<2x8x1xf32, #tpu.memory_space<vmem>>) attributes {dimension_semantics = [#tpu.dimension_semantics<parallel>, #tpu.dimension_semantics<arbitrary>, #tpu.dimension_semantics<arbitrary>, #tpu.dimension_semantics<arbitrary>], iteration_bounds = array<i64: 1, 2, 4, 2>, scalar_prefetch = 0 : i64, scratch_operands = 2 : i64, tpu.core_type = #tpu.core_type<tc>, window_params = [{transform_indices = @transform_0, window_bounds = array<i64: 1, 128>}, {transform_indices = @transform_1, window_bounds = array<i64: 8, 64>}, {transform_indices = @transform_2, window_bounds = array<i64: 64, 128>}, {transform_indices = @transform_3, window_bounds = array<i64: 8, 128>}]} {
    %c0 = arith.constant 0 : index
    %c0_0 = arith.constant 0 : index
    %0 = vector.load %arg5[%c0, %c0_0] : memref<8x64xbf16, #tpu.memory_space<vmem>>, vector<8x64xbf16>
    %c0_1 = arith.constant 0 : index
    %c0_2 = arith.constant 0 : index
    %1 = vector.load %arg6[%c0_1, %c0_2] : memref<64x128xbf16, #tpu.memory_space<vmem>>, vector<64x128xbf16>
    %cst = arith.constant dense<0.000000e+00> : vector<8x128xf32>
    %2 = tpu.matmul %0, %1, %cst {dimension_numbers = #tpu.dot_dimension_numbers<[1], [0], [0], [1], [0, 0, 1, 1], [], []>} : vector<8x64xbf16>, vector<64x128xbf16>, vector<8x128xf32> -> vector<8x128xf32>
    %c0_3 = arith.constant 0 : index
    %c0_4 = arith.constant 0 : index
    %3 = vector.load %arg4[%c0_3, %c0_4] : memref<1x128xf32, #tpu.memory_space<vmem>>, vector<1x128xf32>
    %4 = vector.broadcast %3 : vector<1x128xf32> to vector<8x128xf32>
    %5 = arith.addf %2, %4 : vector<8x128xf32>
    %c0_i32 = arith.constant 0 : i32
    %6 = arith.cmpi eq, %arg1, %c0_i32 : i32
    %7 = arith.extui %6 : i1 to i32
    %c0_i32_5 = arith.constant 0 : i32
    %8 = arith.cmpi ne, %7, %c0_i32_5 : i32
    scf.if %8 {
      %c0_i32_7 = arith.constant 0 : i32
      %12 = arith.cmpi eq, %arg2, %c0_i32_7 : i32
      %13 = arith.index_cast %arg3 : i32 to index
      %c0_8 = arith.constant 0 : index
      %c0_9 = arith.constant 0 : index
      %14 = vector.load %arg8[%13, %c0_8, %c0_9] : memref<2x8x1xf32, #tpu.memory_space<vmem>>, vector<1x8x1xf32>
      %15 = vector.shape_cast %14 : vector<1x8x1xf32> to vector<8x1xf32>
      %cst_10 = arith.constant -3.000000e+38 : f32
      %16 = vector.broadcast %cst_10 : f32 to vector<8x1xf32>
      %17 = arith.select %12, %16, %15 : vector<8x1xf32>
      %18 = arith.index_cast %arg3 : i32 to index
      %c0_11 = arith.constant 0 : index
      %c0_12 = arith.constant 0 : index
      %19 = vector.load %arg9[%18, %c0_11, %c0_12] : memref<2x8x1xf32, #tpu.memory_space<vmem>>, vector<1x8x1xf32>
      %20 = vector.shape_cast %19 : vector<1x8x1xf32> to vector<8x1xf32>
      %cst_13 = arith.constant 0.000000e+00 : f32
      %21 = vector.broadcast %cst_13 : f32 to vector<8x1xf32>
      %22 = arith.select %12, %21, %20 : vector<8x1xf32>
      %cst_14 = arith.constant dense<0xFF800000> : vector<8xf32>
      %23 = vector.multi_reduction <maximumf>, %5, %cst_14 [1] : vector<8x128xf32> to vector<8xf32>
      %24 = vector.shape_cast %23 : vector<8xf32> to vector<8x1xf32>
      %25 = arith.maximumf %17, %24 : vector<8x1xf32>
      %26 = arith.subf %17, %25 : vector<8x1xf32>
      %27 = math.exp %26 : vector<8x1xf32>
      %28 = arith.mulf %22, %27 : vector<8x1xf32>
      %29 = vector.broadcast %25 : vector<8x1xf32> to vector<8x128xf32>
      %30 = arith.subf %5, %29 : vector<8x128xf32>
      %31 = math.exp %30 : vector<8x128xf32>
      %cst_15 = arith.constant dense<0.000000e+00> : vector<8xf32>
      %32 = vector.multi_reduction <add>, %31, %cst_15 [1] : vector<8x128xf32> to vector<8xf32>
      %33 = vector.shape_cast %32 : vector<8xf32> to vector<8x1xf32>
      %34 = arith.addf %28, %33 : vector<8x1xf32>
      %35 = arith.index_cast %arg3 : i32 to index
      %c0_16 = arith.constant 0 : index
      %c0_17 = arith.constant 0 : index
      %36 = vector.load %arg8[%35, %c0_16, %c0_17] : memref<2x8x1xf32, #tpu.memory_space<vmem>>, vector<1x8x1xf32>
      %37 = vector.shape_cast %36 : vector<1x8x1xf32> to vector<8x1xf32>
      %38 = vector.shape_cast %25 : vector<8x1xf32> to vector<1x8x1xf32>
      tpu.vector_store %arg8[%35, %c0_16, %c0_17], %38 {strides = array<i32>} : memref<2x8x1xf32, #tpu.memory_space<vmem>>, vector<1x8x1xf32>,
      %39 = arith.index_cast %arg3 : i32 to index
      %c0_18 = arith.constant 0 : index
      %c0_19 = arith.constant 0 : index
      %40 = vector.load %arg9[%39, %c0_18, %c0_19] : memref<2x8x1xf32, #tpu.memory_space<vmem>>, vector<1x8x1xf32>
      %41 = vector.shape_cast %40 : vector<1x8x1xf32> to vector<8x1xf32>
      %42 = vector.shape_cast %34 : vector<8x1xf32> to vector<1x8x1xf32>
      tpu.vector_store %arg9[%39, %c0_18, %c0_19], %42 {strides = array<i32>} : memref<2x8x1xf32, #tpu.memory_space<vmem>>, vector<1x8x1xf32>,
      %c3_i32 = arith.constant 3 : i32
      %43 = arith.cmpi eq, %arg2, %c3_i32 : i32
      %44 = arith.extui %43 : i1 to i32
      %c0_i32_20 = arith.constant 0 : i32
      %45 = arith.cmpi ne, %44, %c0_i32_20 : i32
      scf.if %45 {
        %46 = math.log %34 : vector<8x1xf32>
        %47 = arith.addf %25, %46 : vector<8x1xf32>
        %48 = arith.index_cast %arg3 : i32 to index
        %c0_21 = arith.constant 0 : index
        %c0_22 = arith.constant 0 : index
        %49 = vector.load %arg8[%48, %c0_21, %c0_22] : memref<2x8x1xf32, #tpu.memory_space<vmem>>, vector<1x8x1xf32>
        %50 = vector.shape_cast %49 : vector<1x8x1xf32> to vector<8x1xf32>
        %51 = vector.shape_cast %47 : vector<8x1xf32> to vector<1x8x1xf32>
        tpu.vector_store %arg8[%48, %c0_21, %c0_22], %51 {strides = array<i32>} : memref<2x8x1xf32, #tpu.memory_space<vmem>>, vector<1x8x1xf32>,
      } else {
      }
    } else {
    }
    %c1_i32 = arith.constant 1 : i32
    %9 = arith.cmpi eq, %arg1, %c1_i32 : i32
    %10 = arith.extui %9 : i1 to i32
    %c0_i32_6 = arith.constant 0 : i32
    %11 = arith.cmpi ne, %10, %c0_i32_6 : i32
    scf.if %11 {
      %12 = arith.index_cast %arg3 : i32 to index
      %c0_7 = arith.constant 0 : index
      %c0_8 = arith.constant 0 : index
      %13 = vector.load %arg8[%12, %c0_7, %c0_8] : memref<2x8x1xf32, #tpu.memory_space<vmem>>, vector<1x8x1xf32>
      %14 = vector.shape_cast %13 : vector<1x8x1xf32> to vector<8x1xf32>
      %15 = vector.broadcast %14 : vector<8x1xf32> to vector<8x128xf32>
      %16 = arith.subf %5, %15 : vector<8x128xf32>
      %c0_9 = arith.constant 0 : index
      %c0_10 = arith.constant 0 : index
      %17 = vector.load %arg7[%c0_9, %c0_10] : memref<8x128xf32, #tpu.memory_space<vmem>>, vector<8x128xf32>
      tpu.vector_store %arg7[%c0_9, %c0_10], %16 {strides = array<i32>} : memref<8x128xf32, #tpu.memory_space<vmem>>, vector<8x128xf32>,
    } else {
    }
    return
  }
  func.func @transform_0(%arg0: i32, %arg1: i32, %arg2: i32, %arg3: i32) -> (i32, i32) {
    %c0_i32 = arith.constant 0 : i32
    %c0_i32_0 = arith.constant 0 : i32
    return %c0_i32, %arg2 : i32, i32
  }
  func.func @transform_1(%arg0: i32, %arg1: i32, %arg2: i32, %arg3: i32) -> (i32, i32) {
    %c2_i32 = arith.constant 2 : i32
    %0 = arith.muli %arg0, %c2_i32 : i32
    %1 = arith.addi %0, %arg3 : i32
    %c0_i32 = arith.constant 0 : i32
    %c0_i32_0 = arith.constant 0 : i32
    return %1, %c0_i32 : i32, i32
  }
  func.func @transform_2(%arg0: i32, %arg1: i32, %arg2: i32, %arg3: i32) -> (i32, i32) {
    %c0_i32 = arith.constant 0 : i32
    %c0_i32_0 = arith.constant 0 : i32
    return %c0_i32, %arg2 : i32, i32
  }
  func.func @transform_3(%arg0: i32, %arg1: i32, %arg2: i32, %arg3: i32) -> (i32, i32) {
    %c2_i32 = arith.constant 2 : i32
    %0 = arith.muli %arg0, %c2_i32 : i32
    %1 = arith.muli %arg3, %arg1 : i32
    %2 = arith.addi %0, %1 : i32
    %3 = arith.muli %arg2, %arg1 : i32
    %c0_i32 = arith.constant 0 : i32
    return %2, %3 : i32, i32
  }
}

</mosaic_0001>

<bundles_post_ra>
// kernel: tpu_custom_call.1
= control target key start
LH: loop header
LB: loop body
LE: loop exit
PB: predicated region body
PF: predicated region fallthrough
CT: control target
= control target key end

     0   :  { %s1431_s0 = inlined_call_operand.hbm [shape: f32[1,512], index: 0, kind: input, shape index: {}]   ;;  %s1432_s1 = inlined_call_operand.hbm [shape: bf16[16,64], index: 1, kind: input, shape index: {}]   ;;  %s1433_s2 = inlined_call_operand.hbm [shape: bf16[64,512], index: 2, kind: input, shape index: {}]   ;;  %s1434_s3 = inlined_call_operand.hbm [shape: f32[16,512], index: 3, kind: output, shape index: {}]  }
   0x1   :  { %1457 = sst [smem:[#allocation32_spill]] %s1431_s0 }
   0x2   :  { %1458 = sst [smem:[#allocation33_spill]] %s1432_s1 }
   0x3   :  { %1459 = sst [smem:[#allocation34_spill]] %s1433_s2 }
   0x4   :  { %1460 = sst [smem:[#allocation35_spill]] %s1434_s3 }
   0x5   :  { %8 = vsyncpa [#allocation5], 0 }
   0x6   :  { %10 = vsyncpa [#allocation5 + $0x1], 0 }
   0x7   :  { %11 = vsyncpa [#allocation8], 0 }
   0x8   :  { %13 = vsyncpa [#allocation8 + $0x1], 0 }
   0x9   :  { %14 = vsyncpa [#allocation6], 0 }
   0xa   :  { %16 = vsyncpa [#allocation6 + $0x1], 0  ;;  %s1084_s12 = smov 0   ;;  %s1086_s13 = smov 0  }
   0xb   :  { %s1088_s14 = smov 0   ;;  %s1090_s15 = smov 0  }
   0xc   :  { %s1092_s16 = smov 0   ;;  %s1094_s17 = smov 0  }
   0xd   :  { %s1096_s18 = smov 0   ;;  %s1098_s19 = smov 0  }
   0xe   :  { %s1100_s20 = smov 0   ;;  %s1102_s21 = smov 0  }
   0xf   :  { %s1104_s22 = smov 0   ;;  %s1106_s23 = smov 0  }
  0x10   :  { %s1108_s24 = smov 0   ;;  %s1110_s25 = smov 0  }
  0x11   :  { %s1112_s26 = smov 0   ;;  %s1114_s27 = smov 0  }
  0x12 LB: > { %1461 = sst [smem:[#allocation15_spill]] %s997_s12  ;;  %s1163_s28 = sadd.s32 4294967295, %s1057_s27   ;;  %s1057_s27 = sphi %s1114_s27, %s22_s27   ;;  %s1053_s26 = sphi %s1112_s26, %s1534_s26   ;;  %s1049_s25 = sphi %s1110_s25, %s1533_s25   ;;  %s1045_s24 = sphi %s1108_s24, %s1532_s24   ;;  %s1041_s23 = sphi %s1106_s23, %s1520_s23   ;;  %s1037_s22 = sphi %s1104_s22, %s1531_s22   ;;  %s1033_s21 = sphi %s1102_s21, %s1530_s21   ;;  %s1029_s20 = sphi %s1100_s20, %s1529_s20   ;;  %s1025_s19 = sphi %s1098_s19, %s1528_s19   ;;  %s1021_s18 = sphi %s1096_s18, %s1527_s18   ;;  %s1017_s17 = sphi %s1094_s17, %s1519_s17   ;;  %s1013_s16 = sphi %s1092_s16, %s1518_s16   ;;  %s1009_s15 = sphi %s1090_s15, %s1517_s15   ;;  %s1005_s14 = sphi %s1088_s14, %s1526_s14   ;;  %s1001_s13 = sphi %s1086_s13, %s1525_s13   ;;  %s997_s12 = sphi %s1084_s12, %s1515_s12  }
  0x13   : > { %1462 = sst [smem:[#allocation16_spill]] %s1001_s13  ;;  %s586_s29 = sadd.s32 4294967294, %s1057_s27  }
  0x14   : > { %1463 = sst [smem:[#allocation17_spill]] %s1013_s16  ;;  %s37_s30 = sadd.s32 1, %s1045_s24 }
  0x15   : > { %1464 = sst [smem:[#allocation18_spill]] %s1017_s17  ;;  %p1168_p0 = scmp.ge.s32.totalorder %s37_s30, 2 }
  0x16   : > { %1465 = sst [smem:[#allocation19_spill]] %s1033_s21  ;;  %p63_p1 = scmp.eq.s32.totalorder %s1057_s27, 0 }
  0x17   : > { %1466 = sst [smem:[#allocation20_spill]] %s1037_s22  ;;  %p69_p2 = scmp.eq.s32.totalorder %s1163_s28, 0 }
  0x18   : > { %1467 = sst [smem:[#allocation21_spill]] %s1041_s23  ;;  %s85_s6 = sadd.s32 1, %s1017_s17 }
  0x19   : > { %1468 = sst [smem:[#allocation22_spill]] %s1053_s26  ;;  %s1536_s30 = smov (%p1168_p0, %s37_s30), 0 }
  0x1a   : > { %1469 = sst [smem:[#allocation23_spill]] %s1163_s28  ;;  %p92_p3 = scmp.ne.s32.totalorder %s1017_s17, %s1013_s16 }
  0x1b   : > { %1471 = sst [smem:[#allocation24_spill]] %s1536_s30  ;;  %p98_p4 = scmp.ne.s32.totalorder %s1013_s16, %s1009_s15 }
  0x1c   : > { %s82_s7 = ssub.s32 %s1045_s24, %s1536_s30  ;;  %p1188_p6 = por %p92_p3, %p63_p1 }
  0x1d   : > { %p83_p5 = scmp.eq.s32.totalorder %s82_s7, 0  ;;  %p1194_p7 = por %p98_p4, %p69_p2 }
  0x1e   : > { %p157_p8 = scmp.ne.s32.totalorder %s1005_s14, %s1001_s13  ;;  %p158_p9 = scmp.eq.s32.totalorder %s1163_s28, 15 }
  0x1f   : > { %s1473_s10 = scalar_select %p1194_p7, 1, 0 }
  0x20   : > { %s1200_s4 = scalar_select %p83_p5, %s1017_s17, %s85_s6  }
  0x21   : > { %1474 = sst [smem:[#allocation25_spill]] %s1473_s10  ;;  %p163_p10 = scmp.ne.s32.totalorder %s1001_s13, %s997_s12 }
  0x22   : > { %1475 = sst [smem:[#allocation26_spill]] %s1200_s4  ;;  %p164_p11 = scmp.eq.s32.totalorder %s586_s29, 15 }
  0x23   : > { %p1207_p12 = por %p158_p9, %p157_p8  ;;  %p1440_p3 = scmp.lt.s32.totalorder %s1057_s27, 16 }
  0x24   : > { %p1211_p13 = por %p164_p11, %p163_p10  ;;  %s201_s11 = sand.u32 1, %s1057_s27  }
  0x25   : > { %s1476_s15 = scalar_select %p1207_p12, 1, 0 }
  0x26   : > { %s1478_s7 = scalar_select %p1211_p13, 1, 0 }
  0x27   : > { %1477 = sst [smem:[#allocation27_spill]] %s1476_s15  ;;  %s203_s6 = sand.u32 1, %s1017_s17  }
  0x28   : > { %1479 = sst [smem:[#allocation28_spill]] %s1478_s7  ;;  %s589_s8 = sshll.u32 %s203_s6, 2 }
  0x29   : > { %s590_s4 = sshll.u32 %s1045_s24, 2  ;;  %s1480_s1 = sld [smem:[#allocation33_spill]] }
  0x2a   : > { %s205_s15 = scalar_lea.vmem [#allocation7], %s589_s8  ;;  %p640_p4 = pnand %p1440_p3, %p1188_p6 }
  0x2b   : > { %s215_s21 = sshll.u32 %s205_s15, 4  ;;  %p593_p5 = scmp.ge.s32.totalorder %s1057_s27, 1  ;;  %s216_s21 = int_to_ptr.vmem [resolvable:$true] %s215_s21 }
  0x2c   : > { %p241_p8 = scmp.lt.s32.totalorder %s1057_s27, 17  ;;  %s1228_s12 = scalar_lea.sflag [#allocation8], %s201_s11 }
  0x2d   : > { %s55_s8 = sadd.s32 1, %s1029_s20  ;;  %p62_p6 = scmp.ne.s32.totalorder %s1029_s20, %s1025_s19 }
  0x2e   : > { %p1231_p9 = pnand %p593_p5, %p241_p8  ;;  %p68_p10 = scmp.ne.s32.totalorder %s1025_s19, %s1021_s18 }
  0x2f   : > { %s211_s3 = scalar_lea.hbm %s1480_s1, %s590_s4  ;;  %s137_s9 = smul.u32 %s1049_s25, %s1053_s26 }
  0x30   : > { %s213_s7 = sshll.u32 %s211_s3, 4  ;;  %s40_s3 = sadd.s32 1, %s1049_s25  ;;  %s214_s7 = int_to_ptr.hbm [resolvable:$true] %s213_s7 }
  0x31   : > { %642 = dma.hbm_to_vmem [thread:$0]  (!%p640_p4), %s214_s7, 64, %s216_s21, %s1228_s12  }
  0x32   : > { %s1538_s3 = smov (!%p1168_p0, %s40_s3), %s1049_s25  ;;  %p1248_p3 = por %p63_p1, %p62_p6 }
  0x33   : > { %p42_p11 = scmp.ge.s32.totalorder %s1538_s3, 4  ;;  %p1254_p4 = por %p69_p2, %p68_p10 }
  0x34   : > { %s1486_s5 = sadd.s32 1, %s1053_s26  ;;  %s184_s15 = sand.u32 1, %s1029_s20  }
  0x35   : > { %s1483_s11 = scalar_select %p1254_p4, 1, 0 }
  0x36   : > { %s1540_s3 = smov (%p42_p11, %s1538_s3), 0  ;;  %s1542_s5 = smov (!%p42_p11, %s1486_s5), %s1053_s26 }
  0x37   : > { %1484 = sst [smem:[#allocation29_spill]] %s1483_s11  ;;  %s52_s18 = ssub.s32 %s1049_s25, %s1540_s3 }
  0x38   : > { %1485 = sst [smem:[#allocation30_spill]] %s1540_s3  ;;  %p46_p0 = scmp.ge.s32.totalorder %s1542_s5, 2 }
  0x39   : > { %p53_p1 = scmp.eq.s32.totalorder %s52_s18, 0  ;;  %s1488_s0 = sld [smem:[#allocation32_spill]] }
  0x3a   : > { %s1544_s5 = smov (%p46_p0, %s1542_s5), 0  ;;  %s1489_s13 = smul.u32 %s1045_s24, %s1053_s26 }
  0x3b   : > { %1487 = sst [smem:[#allocation31_spill]] %s1544_s5  ;;  %s139_s6 = smul.u32 %s1544_s5, %s1536_s30 }
  0x3c   : > { %s1269_s7 = scalar_select %p53_p1, %s1029_s20, %s55_s8  }
  0x3d   : > { %s141_s22 = smul.u32 %s1544_s5, %s1540_s3  ;;  %s142_s10 = ssub.s32 %s1489_s13, %s139_s6 }
  0x3e   : > { %s187_s16 = scalar_lea.vmem [#allocation4], %s184_s15  ;;  %p1490_p5 = scmp.lt.s32.totalorder %s1057_s27, 16 }
  0x3f   : > { %s190_s17 = scalar_lea.hbm %s1488_s0, %s1049_s25  ;;  %s143_s18 = ssub.s32 %s137_s9, %s141_s22 }
  0x40   : > { %s192_s23 = sshll.u32 %s190_s17, 4  ;;  %s194_s28 = sshll.u32 %s187_s16, 4  ;;  %s193_s23 = int_to_ptr.hbm [resolvable:$true] %s192_s23  ;;  %s195_s28 = int_to_ptr.vmem [resolvable:$true] %s194_s28 }
  0x41   : > { %s144_s11 = sor.u32 %s143_s18, %s142_s10  ;;  %p1286_p8 = pnand %p1490_p5, %p1248_p3 }
  0x42   : > { %p145_p2 = scmp.eq.s32.totalorder %s144_s11, 0  ;;  %s591_s1 = sshll.u32 %s184_s15, 5 }
  0x43   : > { %s592_s17 = sshll.u32 %s1049_s25, 2  ;;  %s1492_s29 = sadd.s32 1, %s1005_s14 }
  0x44   : > { %s1294_s13 = scalar_select %p145_p2, %s1005_s14, %s1492_s29  }
  0x45   : > { %s185_s22 = scalar_lea.sflag [#allocation5], %s184_s15  ;;  %s226_s16 = scalar_lea.vmem [#allocation9], %s591_s1 }
  0x46   : > { %639 = dma.hbm_to_vmem [thread:$0]  (!%p1286_p8), %s193_s23, 16, %s195_s28, %s185_s22  }
  0x47   : > { %s233_s10 = sshll.u32 %s226_s16, 4  ;;  %s1493_s2 = sld [smem:[#allocation34_spill]]  ;;  %s234_s10 = int_to_ptr.vmem [resolvable:$true] %s233_s10 }
  0x48   : > { %s1059_s18 = smov 256   ;;  %s1060_s0 = smov 64  }
  0x49   : > { %s1061_s5 = smov 4   ;;  %s1307_s23 = sand.u32 (!%p1231_p9), 1, %s1025_s19  }
  0x4a   : > { %s248_s28 = scalar_lea.sflag (!%p1231_p9), [#allocation5], %s1307_s23  ;;  %s250_s1 = scalar_lea.vmem (!%p1231_p9), [#allocation4], %s1307_s23 }
  0x4b   : > { %245 = sbr.rel (%p1231_p9) target bundleno = 780 (0x30c), region = 32 }
  0x4d   : > { %s230_s11 = scalar_lea.hbm %s1493_s2, %s592_s17 }
  0x4e   : > { %s231_s6 = sshll.u32 %s230_s11, 4  ;;  %s232_s6 = int_to_ptr.hbm [resolvable:$true] %s231_s6 }
  0x4f   : > { %645 = dma.hbm_to_vmem [thread:$0]  (!%p1286_p8), %s232_s6, 512, %s234_s10, %s1228_s12, %s1059_s18, %s1060_s0, %s1061_s5  }
  0x50   : > { %980 = dma.done.wait (%p1254_p4), %s248_s28, 16  }
  0x51   : > { %982 = vsyncadd (%p1254_p4), %s248_s28, 4294967280  ;;  %s1495_s17 = sld [smem:[#allocation23_spill]] }
  0x52   : > { %s1496_s29 = sld [smem:[#allocation17_spill]] }
  0x57   : > { %s256_s0 = sand.u32 1, %s1495_s17  }
  0x58   : > { %s258_s12 = sand.u32 1, %s1496_s29   ;;  %s257_s5 = scalar_lea.sflag [#allocation8], %s256_s0 }
  0x59   : > { %s594_s4 = sshll.u32 %s258_s12, 2 }
  0x5a   : > { %s260_s22 = scalar_lea.vmem [#allocation7], %s594_s4 }
  0x5b   : > { %984 = dma.done.wait (%p1194_p7), %s257_s5, 64  }
  0x5c   : > { %986 = vsyncadd (%p1194_p7), %s257_s5, 4294967232  ;;  %s595_s16 = sshll.u32 %s1307_s23, 5 }
  0x5d   : > { %s270_s10 = scalar_lea.vmem [#allocation9], %s595_s16 }
  0x5e   : > { %988 = dma.done.wait (%p1254_p4), %s257_s5, 512  }
  0x5f   : > { %990 = vsyncadd (%p1254_p4), %s257_s5, 4294966784  ;;  %s1498_s9 = sld [smem:[#allocation16_spill]]  ;;  %v627_v0 = vld [vmem:[%s270_s10 + $0x18] sm:$0xff]  ;;  %v626_v1 = vld [vmem:[%s270_s10 + $0x10] sm:$0xff]  ;;  %vm347_vm0 = vcmask 523264  }
  0x60   : > { %355 = vmatpush.bf16.msra.mxu0 %v627_v0  ;;  %v625_v2 = vld [vmem:[%s270_s10 + $0x8] sm:$0xff]  ;;  %v624_v3 = vld [vmem:[%s270_s10] sm:$0xff]  ;;  %v310_v4 = vld [vmem:[%s260_s22] sm:$0xf]  ;;  %s1499_s18 = sld [smem:[#allocation21_spill]] }
  0x61   : > { %v785_v5 = vld [vmem:[%s250_s1] ss:$0 sm:$0xff] }
  0x64   : > { %356 = vmatpush.bf16.msra.mxu0 %v626_v1 }
  0x65   : > { %s1453_s21 = sand.u32 1, %s1498_s9  }
  0x66   : > { %s1329_s11 = sshll.u32 %s1453_s21, 3  ;;  %p614_p7 = scmp.ne.s32.totalorder %s1499_s18, 0 }
  0x67   : > { %s302_s6 = scalar_lea.vmem [#allocation10], %s1329_s11  ;;  %s1500_s15 = sld [smem:[#allocation20_spill]] (!%p614_p7) }
  0x68   : > { %357 = vmatpush.bf16.msra.mxu0 %v625_v2  ;;  %s1501_s23 = sld [smem:[#allocation19_spill]] (!%p614_p7) }
  0x6c   : > { %358 = vmatpush.bf16.msra.mxu0 %v624_v3 }
  0x6d   : > { %p368_p3 = scmp.eq.s32.totalorder (!%p614_p7), %s1500_s15, 0  ;;  %p616_p9 = scmp.ne.s32.totalorder (!%p614_p7), %s1500_s15, 3 }
  0x6e   : > { %s615_s17 = sshll.u32 (!%p614_p7), %s1501_s23, 3 }
  0x6f   : > { %613 = vmatmul.msk.bf16.vlgmr.msra.gmra.mxu0 %vm347_vm0, %v310_v4  ;;  %s1337_s1 = scalar_lea.vmem (!%p614_p7), [#allocation2], %s615_s17  ;;  %s376_s8 = scalar_lea.vmem (!%p614_p7), [#allocation3], %s615_s17 }
  0xec   : > { %v360_v6 = vpop.f32.mrf.mxu0 }
  0xed   : > { %v361_v7 = vadd.f32 %v785_v5, %v360_v6 }
  0xf0   : > { %367 = sbr.rel (%p614_p7) target bundleno = 620 (0x26c), region = 48 }
  0xf4   : > { %v362_v8 = vpop.f32.mrf.mxu0 }
  0xf5   : > { %379 = vmax.xlane.f32.xlu0 %v361_v7  ;;  %v1062_v9 = vmov 0   ;;  %s372_s28 = scalar_select %p368_p3, 1, 0  ;;  %v371_v11 = vld [vmem:[%s1337_s1] sm:$0xff]  ;;  %vm397_vm2 = vcmask 7168  }
  0xf6   : > { %786 = vset.pattern.permute.xlu0 %v1062_v9  ;;  %s788_s29 = scalar_select %p368_p3, 0, 255 }
  0xf7   : > { %v373_v10 = vstv %s372_s28 }
  0xf8   : > { %vm374_vm1 = vcmp.eq.s32.totalorder %v373_v10, 1  ;;  %v789_v17 = vld [vmem:[%s376_s8] sm:%s788_s29] }
  0xf9   : > { %v375_v12 = vsel %vm374_vm1, -3e+38, %v371_v11 }
 0x168   : > { %v380_v13 = vpop.xlane.xlu0 %379 }
 0x169   : > { %v381_v14 = vmax.f32 %v375_v12, %v380_v13 }
 0x16b   : > { %v382_v15 = vsub.f32 %v375_v12, %v381_v14  ;;  %398 = vst.msk [vmem:[%s1337_s1] sm:$0xff] %vm397_vm2, %v381_v14  ;;  %388 = vperm.xlu0 %786, %v381_v14  }
 0x16d   : > { %v383_v16 = vmul.f32 1.442695, %v382_v15 }
 0x16f   : > { %790 = vpow2.f32 %v383_v16 }
 0x175   : > { %v791_v18 = vpop.eup %790 }
 0x176   : > { %v385_v19 = vmul.f32 %v791_v18, %v789_v17 }
 0x1dd   : > { %v389_v20 = vpop.permute.xlu0 %388 }
 0x1de   : > { %v391_v21 = vsub.f32 %v361_v7, %v389_v20 }
 0x1e0   : > { %v392_v22 = vmul.f32 1.442695, %v391_v21 }
 0x1e2   : > { %792 = vpow2.f32 %v392_v22 }
 0x1e8   : > { %v793_v23 = vpop.eup %792 }
 0x1e9   : > { %394 = vadd.xlane.f32.xlu1 %v793_v23 }
 0x25b   : > { %403 = sbr.rel (%p616_p9) target bundleno = 620 (0x26c), region = 52 }
 0x25c   : > { %v395_v24 = vpop.xlane.xlu1 %394 }
 0x25d   : > { %v396_v25 = vadd.f32 %v395_v24, %v385_v19 }
 0x25f   : > { %399 = vst.msk [vmem:[%s376_s8] sm:$0xff] %vm397_vm2, %v396_v25 }
 0x260   : > { %794 = vlog2.f32 %v396_v25 }
 0x266   : > { %v795_v26 = vpop.eup %794 }
 0x267   : > { %v405_v27 = vmul.f32 0.6931472, %v795_v26 }
 0x269   : > { %v406_v28 = vadd.f32 %v405_v27, %v381_v14 }
 0x26b   : > { %407 = vst.msk [vmem:[%s1337_s1] sm:$0xff] %vm397_vm2, %v406_v28 }
 0x26c PF: > { %s1502_s0 = sld [smem:[#allocation21_spill]] }
 0x272   : > { %p617_p6 = scmp.ne.s32.totalorder %s1502_s0, 1 }
 0x273   : > { %s1503_s12 = sld [smem:[#allocation19_spill]] (!%p617_p6) }
 0x274   : > { %411 = sbr.rel (%p617_p6) target bundleno = 754 (0x2f2), region = 56 }
 0x279   : > { %s618_s4 = sshll.u32 %s1503_s12, 3  ;;  %v1063_v29 = vmov 0  }
 0x27a   : > { %796 = vset.pattern.permute.xlu0 %v1063_v29  ;;  %s413_s5 = scalar_lea.vmem [#allocation2], %s618_s4 }
 0x27b   : > { %v414_v30 = vld [vmem:[%s413_s5] sm:$0xff] }
 0x27c   : > { %417 = vperm.xlu0 %796, %v414_v30  }
 0x2ee   : > { %v418_v31 = vpop.permute.xlu0 %417 }
 0x2ef   : > { %v420_v32 = vsub.f32 %v361_v7, %v418_v31 }
 0x2f1   : > { %421 = vst [vmem:[%s302_s6] sm:$0xff] %v420_v32 }
 0x2f2 PF: > { %s1504_s22 = sld [smem:[#allocation21_spill]]  ;;  %s441_s17 = sshll.u32 %s302_s6, 4  ;;  %s442_s17 = int_to_ptr.vmem [resolvable:$true] %s441_s17 }
 0x2f3   : > { %s1505_s16 = sld [smem:[#allocation19_spill]] }
 0x2f4   : > { %s1506_s10 = sld [smem:[#allocation20_spill]] }
 0x2f5   : > { %s1507_s9 = sld [smem:[#allocation16_spill]] }
 0x2f6   : > { %s1509_s12 = sld [smem:[#allocation35_spill]] }
 0x2f9   : > { %s431_s15 = smul.u32 %s1505_s16, %s1504_s22 }
 0x2fa   : > { %s433_s23 = smul.u32 %s1506_s10, %s1504_s22 }
 0x2fb   : > { %s620_s28 = sshll.u32 %s431_s15, 2  ;;  %s1511_s2 = sand.u32 1, %s1507_s9  }
 0x2fc   : > { %s437_s1 = sadd.s32 %s620_s28, %s433_s23  ;;  %s1510_s4 = smov %s1509_s12 }
 0x2fd   : > { %s621_s29 = sshll.u32 %s437_s1, 3  ;;  %s423_s3 = scalar_lea.sflag [#allocation6], %s1511_s2 }
 0x2fe   : > { %s439_s5 = scalar_lea.hbm %s1509_s12, %s621_s29  ;;  %s907_s22 = scalar_lea.hbm %s1510_s4, 64 }
 0x2ff   : > { %s443_s21 = sshll.u32 %s439_s5, 4  ;;  %s444_s21 = int_to_ptr.hbm [resolvable:$true] %s443_s21 }
 0x300   : > { %s901_s30 = sshra.s32 %s444_s21, 4  ;;  %s902_s30 = int_to_ptr.hbm [resolvable:$true] %s901_s30 }
 0x301   : > { %s903_s26 = scalar_lea.hbm %s902_s30, 8  ;;  %p908_p0 = scmp.lt.s32.totalorder %s902_s30, %s1510_s4 }
 0x302   : > { %p904_p10 = scmp.ne.s32.totalorder %s902_s30, %s903_s26  ;;  %p909_p1 = scmp.lt.s32.totalorder %s907_s22, %s903_s26 }
 0x304   : > { %p905_p11 = pnand %p904_p10, %p1207_p12  ;;  %p910_p2 = por %p909_p1, %p908_p0 }
 0x306   : > { %p906_p4 = pneg %p905_p11 }
 0x308   : > { %p911_p5 = pnand %p910_p2, %p906_p4 }
 0x30a   : > { %914 = shalt.err (!%p911_p5)
}
 0x30b   : > { %634 = dma.vmem_to_hbm [thread:$0]  (%p1207_p12), %s442_s17, 128, %s444_s21, %s423_s3  }
 0x30c PF: > { %s1512_s2 = sld [smem:[#allocation15_spill]]  ;;  %p651_p8 = scmp.ge.s32.totalorder %s1057_s27, 2 }
 0x30e   : > { %p647_p7 = pnand %p651_p8, %p1211_p13 }
 0x310   : > { %p648_p3 = pneg %p647_p7 }
 0x312   : > { %s455_s15 = sand.u32 1, %s1512_s2  }
 0x313   : > { %s456_s23 = scalar_lea.sflag [#allocation6], %s455_s15 }
 0x314   : > { %992 = dma.done.wait (%p648_p3), %s456_s23, 128  }
 0x315   : > { %994 = vsyncadd (%p648_p3), %s456_s23, 4294967168  ;;  %s22_s27 = sadd.s32 1, %s1057_s27   ;;  %s1515_s12 = sld [smem:[#allocation16_spill]] }
 0x316   : > { %p1378_p9 = scmp.ge.s32.totalorder %s22_s27, 18   ;;  %s1516_s30 = smov %s1294_s13 }
 0x317   : > { %s1517_s15 = sld [smem:[#allocation17_spill]]  ;;  %s1525_s13 = smov %s1005_s14 }
 0x318   : > { %s1518_s16 = sld [smem:[#allocation18_spill]]  ;;  %s1526_s14 = smov %s1516_s30 }
 0x319   : > { %s1519_s17 = sld [smem:[#allocation26_spill]]  ;;  %s1527_s18 = smov %s1025_s19 }
 0x31a   : > { %s1520_s23 = sld [smem:[#allocation22_spill]]  ;;  %s1528_s19 = smov %s1029_s20 }
 0x31b   : > { %s1521_s3 = sld [smem:[#allocation24_spill]]  ;;  %s1529_s20 = smov %s1269_s7 }
 0x31c   : > { %s1522_s28 = sld [smem:[#allocation30_spill]]  ;;  %s1530_s21 = smov %s1045_s24 }
 0x31d   : > { %s1523_s1 = sld [smem:[#allocation31_spill]]  ;;  %s1531_s22 = smov %s1049_s25 }
 0x31f   :  { %21 = sbr.rel (!%p1378_p9) target bundleno = 18 (0x12), region = 116 }
 0x321   : > { %s1532_s24 = smov %s1521_s3 }
 0x322   : > { %s1533_s25 = smov %s1522_s28 }
 0x323   : > { %s1534_s26 = smov %s1523_s1 }
 0x324   :  { %462 = vsyncpa [#allocation5], 1 }
 0x325   :  { %464 = vsyncpa [#allocation5 + $0x1], 1 }
 0x326   :  { %465 = vsyncpa [#allocation8], 1 }
 0x327   :  { %467 = vsyncpa [#allocation8 + $0x1], 1 }
 0x328   :  { %468 = vsyncpa [#allocation6], 1 }
 0x329   :  { %470 = vsyncpa [#allocation6 + $0x1], 1 }

</bundles_post_ra>
